<compile_context>
chip_gen: v7x
topology: tpu7x:2x2x1
jax: 0.10.0
libtpu: 0.0.40
codegen_flags: <defaults>
</compile_context>

<pallas_src>
import math

import jax
import jax.numpy as jnp
from jax.experimental import pallas as pl
from jax.experimental.pallas import tpu as pltpu

INPUT_DIM = 1     # matches x = np.linspace(0, 1, 100) -> features of size 1
HIDDEN = 50
OUT = 1

LANE = 128        # TPU lane width; batch blocks are multiples of this
HP = 56           # hidden padded to a sublane multiple (50 real + 1 bias unit + 5 zero)
MAX_TB = 2048     # max batch block (lanes); per-step h1 is 56*2048*4B ~= 0.45 MiB


def _mlp_kernel(x_ref, w1_ref, b1_ref, w23_ref, o_ref):
    # x_ref:   (1, TB)   f32  lane-dense batch block
    # w1_ref:  (HP, 1)   f32  fc1 weight column (sublanes 50.. are the bias unit / zeros)
    # b1_ref:  (HP, 1)   f32  fc1 bias column   (sublane 50 holds the constant 1.0)
    # w23_ref: (HP, 1)   f32  folded (w2 @ w3) column; sublane 50 = (b2 @ w3)/tanh(1)
    # o_ref:   (1, TB)   f32  lane-dense output block
    x = x_ref[...]                                              # (1, TB)

    # fc1 + tanh: VPU broadcast (INPUT_DIM == 1) + EUP tanh on a (56, TB) slab.
    h1 = jnp.tanh(w1_ref[...] * x + b1_ref[...])                # (HP, TB)

    # Folded fc2∘fc3 (+ folded bias via the constant hidden unit):
    # VPU multiply + cheap sublane reduce (axis=0).  Padded sublanes give 0*0.
    y = jnp.sum(h1 * w23_ref[...], axis=0, keepdims=True)       # (1, TB)

    # softplus(y) = max(y, 0) + log1p(exp(-|y|))   (numerically stable), lane-dense.
    o_ref[...] = jnp.maximum(y, 0.0) + jnp.log1p(jnp.exp(-jnp.abs(y)))


def prepare_params(w1, b1, w2, b2, w3):
    """One-time (outside the hot path) folding + sublane padding of parameters.

    w1: (1, 50), b1: (50,), w2: (50, 50), b2: (50,), w3: (50, 1).
    Returns three (HP, 1) f32 columns consumed directly by the kernel.
    Sublane 50 is a constant hidden unit that carries the folded fc2 bias:
      pre-act = x*0 + 1 -> tanh(1) -> * (b2@w3)/tanh(1) == b2@w3.
    """
    w23 = (w2 @ w3).reshape(HIDDEN)                     # (50,)
    b23 = (b2 @ w3).reshape(())                         # scalar
    c = jnp.float32(1.0)
    t = jnp.tanh(c)
    pad = HP - HIDDEN - 1                               # = 5 inert sublanes

    zeros_pad = jnp.zeros((pad,), jnp.float32)
    w1_col = jnp.concatenate(
        [w1.reshape(HIDDEN).astype(jnp.float32), jnp.zeros((1 + pad,), jnp.float32)]
    ).reshape(HP, 1)
    b1_col = jnp.concatenate(
        [b1.reshape(HIDDEN).astype(jnp.float32), c[None], zeros_pad]
    ).reshape(HP, 1)
    w23_col = jnp.concatenate(
        [w23.astype(jnp.float32), (b23.astype(jnp.float32) / t)[None], zeros_pad]
    ).reshape(HP, 1)
    return w1_col, b1_col, w23_col


def _choose_block(B):
    """Balanced, lane-multiple batch blocks; >=2 grid steps when B > 128 (v7x)."""
    nb = -(-B // LANE)                       # number of 128-lane blocks needed
    if nb <= 1:
        return LANE, 1
    n_steps = max(2, -(-(nb * LANE) // MAX_TB))
    tb = min(MAX_TB, (-(-nb // n_steps)) * LANE)
    n_steps = -(-(nb * LANE) // tb)
    return tb, n_steps


@jax.jit
def neural_network_forward(x, w1_col, b1_col, w23_col):
    """x: (B, 1) f32; pre-folded/padded params from prepare_params; returns (B, 1)."""
    B = x.shape[0]
    tb, n_steps = _choose_block(B)
    Bp = tb * n_steps
    x_row = jnp.pad(x.reshape(B).astype(jnp.float32), (0, Bp - B)).reshape(1, Bp)

    out_row = pl.pallas_call(
        _mlp_kernel,
        out_shape=jax.ShapeDtypeStruct((1, Bp), jnp.float32),
        grid_spec=pltpu.PrefetchScalarGridSpec(
            num_scalar_prefetch=0,
            grid=(n_steps,),
            in_specs=[
                pl.BlockSpec((1, tb), lambda i: (0, i)),     # x batch block (lane-dense)
                pl.BlockSpec((HP, 1), lambda i: (0, 0)),     # w1 column
                pl.BlockSpec((HP, 1), lambda i: (0, 0)),     # b1 column (+const unit)
                pl.BlockSpec((HP, 1), lambda i: (0, 0)),     # folded w2@w3 (+b2@w3 unit)
            ],
            out_specs=pl.BlockSpec((1, tb), lambda i: (0, i)),
        ),
        compiler_params=pltpu.CompilerParams(
            dimension_semantics=("parallel",)),
    )(x_row, w1_col, b1_col, w23_col)

    return out_row.reshape(Bp, OUT if OUT == 1 else OUT)[:B]


def init_params(key, input_dim=INPUT_DIM):
    """Deterministic init mimicking nn.Linear default U(-1/sqrt(fan_in), 1/sqrt(fan_in))."""
    k1, k2, k3, k4, k5 = jax.random.split(key, 5)

    def lin(kw, kb, fan_in, fan_out, bias=True):
        bound = 1.0 / math.sqrt(fan_in)
        w = jax.random.uniform(kw, (fan_in, fan_out), jnp.float32, -bound, bound)
        b = (jax.random.uniform(kb, (fan_out,), jnp.float32, -bound, bound)
             if bias else None)
        return w, b

    w1, b1 = lin(k1, k2, input_dim, HIDDEN)
    w2, b2 = lin(k3, k4, HIDDEN, HIDDEN)
    w3, _ = lin(k5, k5, HIDDEN, OUT, bias=False)
    return w1, b1, w2, b2, w3


def _reference(x, w1, b1, w2, b2, w3):
    h = jnp.tanh(x @ w1 + b1)
    h = h @ w2 + b2
    y = h @ w3
    return jax.nn.softplus(y)


if __name__ == "__main__":
    key = jax.random.PRNGKey(0)
    w1, b1, w2, b2, w3 = init_params(key)

    # One-time fold + pad (outside the jitted hot path).
    w1_col, b1_col, w23_col = prepare_params(w1, b1, w2, b2, w3)

    # Input matching the module spec: x = np.linspace(0, 1, 100) as a (100, 1) batch.
    B = 100
    x = jnp.linspace(0.0, 1.0, B, dtype=jnp.float32).reshape(B, INPUT_DIM)
    out = jax.block_until_ready(neural_network_forward(x, w1_col, b1_col, w23_col))
    ref = _reference(x, w1, b1, w2, b2, w3)
    assert out.shape == (B, OUT), out.shape
    assert jnp.allclose(out, ref, atol=1e-5, rtol=1e-4), (out, ref)

    # Also exercise the multi-step grid path (>= 2 parallel steps, padded batch).
    B2 = 300
    x2 = jnp.linspace(0.0, 1.0, B2, dtype=jnp.float32).reshape(B2, INPUT_DIM)
    out2 = jax.block_until_ready(neural_network_forward(x2, w1_col, b1_col, w23_col))
    ref2 = _reference(x2, w1, b1, w2, b2, w3)
    assert out2.shape == (B2, OUT), out2.shape
    assert jnp.allclose(out2, ref2, atol=1e-5, rtol=1e-4), (out2, ref2)

    print("KERNEL_OK")
</pallas_src>

<mosaic_0001>
module attributes {stable_mosaic.version = 11 : i64} {
  func.func @_mlp_kernel(%arg0: i32, %arg1: memref<1x128xf32, #tpu.memory_space<vmem>>, %arg2: memref<56x1xf32, #tpu.memory_space<vmem>>, %arg3: memref<56x1xf32, #tpu.memory_space<vmem>>, %arg4: memref<56x1xf32, #tpu.memory_space<vmem>>, %arg5: memref<1x128xf32, #tpu.memory_space<vmem>>) attributes {dimension_semantics = [#tpu.dimension_semantics<parallel>], iteration_bounds = array<i64: 1>, scalar_prefetch = 0 : i64, scratch_operands = 0 : i64, tpu.core_type = #tpu.core_type<tc>, window_params = [{transform_indices = @transform_0, window_bounds = array<i64: 1, 128>}, {pipeline_mode = #tpu.pipeline_mode<synchronous>, transform_indices = @transform_1, window_bounds = array<i64: 56, 1>}, {pipeline_mode = #tpu.pipeline_mode<synchronous>, transform_indices = @transform_2, window_bounds = array<i64: 56, 1>}, {pipeline_mode = #tpu.pipeline_mode<synchronous>, transform_indices = @transform_3, window_bounds = array<i64: 56, 1>}, {transform_indices = @transform_4, window_bounds = array<i64: 1, 128>}]} {
    %c0 = arith.constant 0 : index
    %c0_0 = arith.constant 0 : index
    %0 = vector.load %arg1[%c0, %c0_0] : memref<1x128xf32, #tpu.memory_space<vmem>>, vector<1x128xf32>
    %c0_1 = arith.constant 0 : index
    %c0_2 = arith.constant 0 : index
    %1 = vector.load %arg2[%c0_1, %c0_2] : memref<56x1xf32, #tpu.memory_space<vmem>>, vector<56x1xf32>
    %2 = vector.broadcast %1 : vector<56x1xf32> to vector<56x128xf32>
    %3 = vector.broadcast %0 : vector<1x128xf32> to vector<56x128xf32>
    %4 = arith.mulf %2, %3 : vector<56x128xf32>
    %c0_3 = arith.constant 0 : index
    %c0_4 = arith.constant 0 : index
    %5 = vector.load %arg3[%c0_3, %c0_4] : memref<56x1xf32, #tpu.memory_space<vmem>>, vector<56x1xf32>
    %6 = vector.broadcast %5 : vector<56x1xf32> to vector<56x128xf32>
    %7 = arith.addf %4, %6 : vector<56x128xf32>
    %8 = math.tanh %7 : vector<56x128xf32>
    %c0_5 = arith.constant 0 : index
    %c0_6 = arith.constant 0 : index
    %9 = vector.load %arg4[%c0_5, %c0_6] : memref<56x1xf32, #tpu.memory_space<vmem>>, vector<56x1xf32>
    %10 = vector.broadcast %9 : vector<56x1xf32> to vector<56x128xf32>
    %11 = arith.mulf %8, %10 : vector<56x128xf32>
    %cst = arith.constant dense<0.000000e+00> : vector<128xf32>
    %12 = vector.multi_reduction <add>, %11, %cst [0] : vector<56x128xf32> to vector<128xf32>
    %13 = vector.shape_cast %12 : vector<128xf32> to vector<1x128xf32>
    %cst_7 = arith.constant 0.000000e+00 : f32
    %14 = vector.broadcast %cst_7 : f32 to vector<1x128xf32>
    %15 = arith.maximumf %13, %14 : vector<1x128xf32>
    %16 = math.absf %13 : vector<1x128xf32>
    %cst_8 = arith.constant 0.000000e+00 : f32
    %17 = vector.broadcast %cst_8 : f32 to vector<1x128xf32>
    %18 = arith.subf %17, %16 : vector<1x128xf32>
    %19 = math.exp %18 : vector<1x128xf32>
    %20 = math.log1p %19 : vector<1x128xf32>
    %21 = arith.addf %15, %20 : vector<1x128xf32>
    %c0_9 = arith.constant 0 : index
    %c0_10 = arith.constant 0 : index
    %22 = vector.load %arg5[%c0_9, %c0_10] : memref<1x128xf32, #tpu.memory_space<vmem>>, vector<1x128xf32>
    tpu.vector_store %arg5[%c0_9, %c0_10], %21 {strides = array<i32>} : memref<1x128xf32, #tpu.memory_space<vmem>>, vector<1x128xf32>,
    return
  }
  func.func @transform_0(%arg0: i32) -> (i32, i32) {
    %c0_i32 = arith.constant 0 : i32
    %c0_i32_0 = arith.constant 0 : i32
    return %c0_i32, %arg0 : i32, i32
  }
  func.func @transform_1(%arg0: i32) -> (i32, i32) {
    %c0_i32 = arith.constant 0 : i32
    %c0_i32_0 = arith.constant 0 : i32
    %c0_i32_1 = arith.constant 0 : i32
    return %c0_i32, %c0_i32_0 : i32, i32
  }
  func.func @transform_2(%arg0: i32) -> (i32, i32) {
    %c0_i32 = arith.constant 0 : i32
    %c0_i32_0 = arith.constant 0 : i32
    %c0_i32_1 = arith.constant 0 : i32
    return %c0_i32, %c0_i32_0 : i32, i32
  }
  func.func @transform_3(%arg0: i32) -> (i32, i32) {
    %c0_i32 = arith.constant 0 : i32
    %c0_i32_0 = arith.constant 0 : i32
    %c0_i32_1 = arith.constant 0 : i32
    return %c0_i32, %c0_i32_0 : i32, i32
  }
  func.func @transform_4(%arg0: i32) -> (i32, i32) {
    %c0_i32 = arith.constant 0 : i32
    %c0_i32_0 = arith.constant 0 : i32
    return %c0_i32, %arg0 : i32, i32
  }
}

</mosaic_0001>

<bundles_post_ra>
// kernel: neural_network_forward.1
= control target key start
LH: loop header
LB: loop body
LE: loop exit
PB: predicated region body
PF: predicated region fallthrough
CT: control target
= control target key end

     0   :  { %v232_v0 = vmov 0   ;;  %s327_s1 = inlined_call_operand.vmem [shape: f32[56,1], index: 1, kind: input, shape index: {}]   ;;  %s328_s2 = inlined_call_operand.vmem [shape: f32[56,1], index: 2, kind: input, shape index: {}]   ;;  %s329_s3 = inlined_call_operand.vmem [shape: f32[56,1], index: 3, kind: input, shape index: {}]   ;;  %s330_s0 = inlined_call_operand.vmem [shape: f32[1,128], index: 0, kind: input, shape index: {}]   ;;  %s331_s4 = inlined_call_operand.vmem [shape: f32[1,128], index: 4, kind: output, shape index: {}]  }
   0x1   :  { %213 = vset.pattern.permute.xlu1 %v232_v0  ;;  %212 = vset.pattern.permute.xlu0 %v232_v0  ;;  %v20_v1 = vld [vmem:[%s327_s1 + $0x10] sm:$0xff]  ;;  %v18_v2 = vld [vmem:[%s327_s1] sm:$0xff]  ;;  %v19_v4 = vld [vmem:[%s327_s1 + $0x8] sm:$0xff] }
   0x2   :  { %37 = vperm.xlu1 %213, %v20_v1   ;;  %27 = vperm.xlu0 %212, %v18_v2   ;;  %v73_v3 = vld [vmem:[%s328_s2] sm:$0xff]  ;;  %v21_v5 = vld [vmem:[%s327_s1 + $0x18] sm:$0xff]  ;;  %v74_v6 = vld [vmem:[%s328_s2 + $0x8] sm:$0xff] }
   0x3   :  { %v22_v7 = vld [vmem:[%s327_s1 + $0x20] sm:$0xff]  ;;  %v75_v8 = vld [vmem:[%s328_s2 + $0x10] sm:$0xff]  ;;  %v23_v9 = vld [vmem:[%s327_s1 + $0x28] sm:$0xff] }
   0x4   :  { %v76_v10 = vld [vmem:[%s328_s2 + $0x18] sm:$0xff]  ;;  %v24_v11 = vld [vmem:[%s327_s1 + $0x30] sm:$0xff]  ;;  %v77_v12 = vld [vmem:[%s328_s2 + $0x20] sm:$0xff] }
   0x5   :  { %v79_v13 = vld [vmem:[%s328_s2 + $0x30] sm:$0xff]  ;;  %v78_v14 = vld [vmem:[%s328_s2 + $0x28] sm:$0xff]  ;;  %v129_v16 = vld [vmem:[%s329_s3] sm:$0xff] }
   0x6   :  { %82 = vperm.xlu1 %213, %v73_v3   ;;  %32 = vperm.xlu0 %212, %v19_v4   ;;  %v130_v15 = vld [vmem:[%s329_s3 + $0x8] sm:$0xff]  ;;  %v132_v17 = vld [vmem:[%s329_s3 + $0x18] sm:$0xff]  ;;  %v131_v18 = vld [vmem:[%s329_s3 + $0x10] sm:$0xff] }
   0x7   :  { %v134_v19 = vld [vmem:[%s329_s3 + $0x28] sm:$0xff]  ;;  %v133_v20 = vld [vmem:[%s329_s3 + $0x20] sm:$0xff]  ;;  %v135_v21 = vld [vmem:[%s329_s3 + $0x30] sm:$0xff] }
   0x8   :  { %v210_v26 = vld [vmem:[%s330_s0] ss:$0 sm:$0xff] }
   0xa   :  { %42 = vperm.xlu1 %213, %v21_v5   ;;  %87 = vperm.xlu0 %212, %v74_v6  }
   0xe   :  { %47 = vperm.xlu1 %213, %v22_v7   ;;  %92 = vperm.xlu0 %212, %v75_v8  }
  0x12   :  { %52 = vperm.xlu1 %213, %v23_v9   ;;  %97 = vperm.xlu0 %212, %v76_v10  }
  0x16   :  { %57 = vperm.xlu1 %213, %v24_v11   ;;  %102 = vperm.xlu0 %212, %v77_v12  }
  0x1a   :  { %112 = vperm.xlu1 %213, %v79_v13   ;;  %107 = vperm.xlu0 %212, %v78_v14  }
  0x1e   :  { %143 = vperm.xlu1 %213, %v130_v15   ;;  %138 = vperm.xlu0 %212, %v129_v16  }
  0x22   :  { %153 = vperm.xlu1 %213, %v132_v17   ;;  %148 = vperm.xlu0 %212, %v131_v18  }
  0x26   :  { %163 = vperm.xlu1 %213, %v134_v19   ;;  %158 = vperm.xlu0 %212, %v133_v20  }
  0x2a   :  { %168 = vperm.xlu0 %212, %v135_v21  }
  0x81   :  { %v38_v22 = vpop.permute.xlu1 %37  ;;  %v28_v23 = vpop.permute.xlu0 %27 }
  0x82   :  { %v66_v29 = vmul.f32 %v210_v26, %v28_v23  ;;  %v68_v35 = vmul.f32 %v210_v26, %v38_v22 }
  0x85   :  { %v83_v24 = vpop.permute.xlu1 %82  ;;  %v33_v25 = vpop.permute.xlu0 %32 }
  0x86   :  { %v67_v30 = vmul.f32 %v210_v26, %v33_v25  ;;  %v115_v33 = vadd.f32 %v83_v24, %v66_v29 }
  0x88   :  { %214 = vtanh.f32 %v115_v33 }
  0x89   :  { %v43_v27 = vpop.permute.xlu1 %42  ;;  %v88_v28 = vpop.permute.xlu0 %87 }
  0x8a   :  { %v116_v34 = vadd.f32 %v88_v28, %v67_v30  ;;  %v69_v38 = vmul.f32 %v210_v26, %v43_v27 }
  0x8c   :  { %216 = vtanh.f32 %v116_v34 }
  0x8d   :  { %v48_v31 = vpop.permute.xlu1 %47  ;;  %v93_v32 = vpop.permute.xlu0 %92 }
  0x8e   :  { %v117_v39 = vadd.f32 %v93_v32, %v68_v35  ;;  %v70_v40 = vmul.f32 %v210_v26, %v48_v31 }
  0x90   :  { %218 = vtanh.f32 %v117_v39 }
  0x91   :  { %v53_v36 = vpop.permute.xlu1 %52  ;;  %v98_v37 = vpop.permute.xlu0 %97 }
  0x92   :  { %v118_v41 = vadd.f32 %v98_v37, %v69_v38  ;;  %v71_v45 = vmul.f32 %v210_v26, %v53_v36  ;;  %v215_v51 = vpop.eup %214 }
  0x94   :  { %220 = vtanh.f32 %v118_v41 }
  0x95   :  { %v58_v42 = vpop.permute.xlu1 %57  ;;  %v103_v43 = vpop.permute.xlu0 %102 }
  0x96   :  { %v119_v44 = vadd.f32 %v103_v43, %v70_v40  ;;  %v72_v46 = vmul.f32 %v210_v26, %v58_v42  ;;  %v217_v52 = vpop.eup %216 }
  0x98   :  { %222 = vtanh.f32 %v119_v44 }
  0x99   :  { %v113_v47 = vpop.permute.xlu1 %112  ;;  %v108_v48 = vpop.permute.xlu0 %107 }
  0x9a   :  { %v120_v49 = vadd.f32 %v108_v48, %v71_v45  ;;  %v121_v50 = vadd.f32 %v113_v47, %v72_v46  ;;  %v219_v57 = vpop.eup %218 }
  0x9c   :  { %224 = vtanh.f32 %v120_v49 }
  0x9d   :  { %v144_v53 = vpop.permute.xlu1 %143  ;;  %v139_v54 = vpop.permute.xlu0 %138  ;;  %226 = vtanh.f32 %v121_v50 }
  0x9e   :  { %v172_v55 = vmul.f32 %v217_v52, %v144_v53  ;;  %v171_v56 = vmul.f32 %v215_v51, %v139_v54  ;;  %v221_v62 = vpop.eup %220 }
  0xa0   :  { %v178_v60 = vadd.f32 %v172_v55, %v171_v56 }
  0xa1   :  { %v154_v58 = vpop.permute.xlu1 %153  ;;  %v149_v59 = vpop.permute.xlu0 %148 }
  0xa2   :  { %v173_v61 = vmul.f32 %v219_v57, %v149_v59  ;;  %v174_v63 = vmul.f32 %v221_v62, %v154_v58  ;;  %v223_v1 = vpop.eup %222 }
  0xa4   :  { %v179_v0 = vadd.f32 %v178_v60, %v173_v61 }
  0xa5   :  { %v164_v2 = vpop.permute.xlu1 %163  ;;  %v159_v3 = vpop.permute.xlu0 %158 }
  0xa6   :  { %v175_v4 = vmul.f32 %v223_v1, %v159_v3  ;;  %v180_v5 = vadd.f32 %v179_v0, %v174_v63  ;;  %v225_v6 = vpop.eup %224 }
  0xa7   :  { %v176_v7 = vmul.f32 %v225_v6, %v164_v2  ;;  %v227_v9 = vpop.eup %226 }
  0xa8   :  { %v181_v8 = vadd.f32 %v180_v5, %v175_v4 }
  0xa9   :  { %v169_v10 = vpop.permute.xlu0 %168 }
  0xaa   :  { %v177_v11 = vmul.f32 %v227_v9, %v169_v10  ;;  %v182_v12 = vadd.f32 %v181_v8, %v176_v7 }
  0xac   :  { %v183_v13 = vadd.f32 %v182_v12, %v177_v11 }
  0xae   :  { %v184_v14 = vrot.slane %v183_v13, 4 }
  0xb0   :  { %v185_v15 = vadd.f32 %v184_v14, %v183_v13 }
  0xb2   :  { %v186_v16 = vrot.slane %v185_v15, 2 }
  0xb4   :  { %v187_v17 = vadd.f32 %v186_v16, %v185_v15 }
  0xb6   :  { %v188_v18 = vrot.slane %v187_v17, 1 }
  0xb8   :  { %v189_v19 = vadd.f32 %v188_v18, %v187_v17 }
  0xba   :  { %v191_v20 = vand.u32 2147483647, %v189_v19  ;;  %v190_v31 = vmax.f32 %v189_v19, 0.0 }
  0xbc   :  { %v192_v21 = vsub.f32 0.0, %v191_v20 }
  0xbe   :  { %v193_v22 = vmul.f32 1.442695, %v192_v21 }
  0xc0   :  { %228 = vpow2.f32 %v193_v22 }
  0xca   :  { %v229_v23 = vpop.eup %228 }
  0xcb   :  { %v195_v24 = vadd.f32 1.0, %v229_v23  ;;  %v198_v25 = vmul.f32 -0.5, %v229_v23  ;;  %v201_v27 = vand.u32 2147483647, %v229_v23 }
  0xcd   :  { %230 = vlog2.f32 %v195_v24  ;;  %v199_v26 = vadd.f32 1.0, %v198_v25  ;;  %vm202_vm0 = vcmp.lt.f32.partialorder %v201_v27, 0.0004427343 }
  0xcf   :  { %v200_v30 = vmul.f32 %v229_v23, %v199_v26 }
  0xd7   :  { %v231_v28 = vpop.eup %230 }
  0xd8   :  { %v197_v29 = vmul.f32 0.6931472, %v231_v28 }
  0xda   :  { %v203_v32 = vsel %vm202_vm0, %v200_v30, %v197_v29 }
  0xdb   :  { %v204_v33 = vadd.f32 %v203_v32, %v190_v31 }
  0xdd   :  { %205 = vst [vmem:[%s331_s4] sm:$0x1] %v204_v33 }

</bundles_post_ra>
